<compile_context>
chip_gen: v7x
topology: tpu7x:2x2x1
jax: 0.10.0
libtpu: 0.0.40
codegen_flags: <defaults>
</compile_context>

<pallas_src>
import functools

import jax
import jax.numpy as jnp
from jax.experimental import pallas as pl
from jax.experimental.pallas import tpu as pltpu

DIN = 28 * 28          # flattened PMNIST input width (784)
DIN_PAD = 896          # 7 * 128: lane-dense K for the layer-1 matmul
HID = 100              # dense1 / dense2 output width
NOUT = 10              # dense3 output width
DPAD = 128             # lane-padded hidden/output width used inside the kernel
DROPOUT_P = 0.2        # nn.Dropout(p=0.2)


# ----------------------------------------------------------------------------
# Fused kernel: (dropout) -> flipout dense -> relu, three times.
# All randomness arrives as inputs; padded weight/bias/sigma entries are zero so
# padded columns stay exactly zero through every layer.
# ----------------------------------------------------------------------------
def _fused_pmnist_flipout_kernel(
        x_ref,                 # (bb, DIN_PAD) bf16   dropout-scaled input
        xs_ref,                # (bb, DIN_PAD) bf16   x * sign_in (layer 1)
        pm_ref,                # (bb, 5*DPAD) bf16    packed per-sample multipliers
        muw1_ref, dw1_ref,     # (DIN_PAD, DPAD) bf16 layer-1 mu_W / delta_W
        muw2_ref, dw2_ref,     # (DPAD, DPAD) bf16    layer-2 mu_W / delta_W
        muw3_ref, dw3_ref,     # (DPAD, DPAD) bf16    layer-3 mu_W / delta_W
        bias_ref,              # (8, DPAD) f32        rows: mu_b1,db1,mu_b2,db2,mu_b3,db3
        o_ref,                 # (bb, DPAD) f32
        *, training):
    f32 = jnp.float32
    bf16 = jnp.bfloat16

    # Per-sample multipliers (static, 128-aligned slices of one packed load).
    pm = pm_ref[...]
    so1 = pm[:, 0 * DPAD:1 * DPAD].astype(f32)   # sign_out layer 1
    m2 = pm[:, 1 * DPAD:2 * DPAD].astype(f32)    # dropout2-scale * sign_in layer 2
    so2 = pm[:, 2 * DPAD:3 * DPAD].astype(f32)   # sign_out layer 2
    m3 = pm[:, 3 * DPAD:4 * DPAD].astype(f32)    # dropout3-scale * sign_in layer 3
    so3 = pm[:, 4 * DPAD:5 * DPAD].astype(f32)   # sign_out layer 3

    mub1 = bias_ref[0:1, :]
    db1 = bias_ref[1:2, :]
    mub2 = bias_ref[2:3, :]
    db2 = bias_ref[3:4, :]
    mub3 = bias_ref[4:5, :]
    db3 = bias_ref[5:6, :]

    # ---- Layer 1: Dropout(0.2) (folded into x in the wrapper) + flipout + ReLU
    mean = jnp.dot(x_ref[...], muw1_ref[...], preferred_element_type=f32) + mub1
    pert = (jnp.dot(xs_ref[...], dw1_ref[...], preferred_element_type=f32) + db1) * so1
    h = jnp.maximum(mean + pert, 0.0)                       # (bb, DPAD) f32

    # ---- Layer 2: Dropout(0.2) + flipout + ReLU
    # m2 = keep/(1-p) * sign_in (train) or sign_in (eval); |m2| is the dropout scale.
    h_mean = (h * jnp.abs(m2)) if training else h
    h_pert = (h * m2).astype(bf16)
    mean = jnp.dot(h_mean.astype(bf16), muw2_ref[...], preferred_element_type=f32) + mub2
    pert = (jnp.dot(h_pert, dw2_ref[...], preferred_element_type=f32) + db2) * so2
    h = jnp.maximum(mean + pert, 0.0)

    # ---- Layer 3: Dropout(0.2) + flipout (no ReLU)
    h_mean = (h * jnp.abs(m3)) if training else h
    h_pert = (h * m3).astype(bf16)
    mean = jnp.dot(h_mean.astype(bf16), muw3_ref[...], preferred_element_type=f32) + mub3
    pert = (jnp.dot(h_pert, dw3_ref[...], preferred_element_type=f32) + db3) * so3
    o_ref[...] = (mean + pert).astype(o_ref.dtype)


# ----------------------------------------------------------------------------
# Batch tiling: >=2 "parallel" grid tiles for medium/large batches (v7x's two
# TensorCores both get work); small batches stay one tile.
# ----------------------------------------------------------------------------
def _choose_bb(B):
    if B <= 128:
        return B
    for bb in (512, 384, 256, 128):
        if B % bb == 0 and B // bb >= 2:
            return bb
    return B   # odd batch size: single full tile (block == full array dims)


# ----------------------------------------------------------------------------
# Host-side wrapper.
# ----------------------------------------------------------------------------
@functools.partial(jax.jit, static_argnames=("training",))
def nonadaptive_dropout_pmnist_forward(X, packed_params, key, training=False):
    """Forward pass.  X: (B, 1, 28, 28) f32 NCHW.  Returns (B, 10) f32."""
    B = X.shape[0]
    p1, p2, p3 = packed_params
    muw1, sigw1, mub1, sigb1 = p1
    muw2, sigw2, mub2, sigb2 = p2
    muw3, sigw3, mub3, sigb3 = p3

    (k_ew1, k_eb1, k_ew2, k_eb2, k_ew3, k_eb3,
     k_s1, k_pm, k_d1, k_d2, k_d3) = jax.random.split(key, 11)

    # ---- Batch-shared weight/bias noise (flipout shares eps over the batch).
    # Computed ONCE here (XLA), padded sigma == 0 -> padded delta == 0 exactly.
    def draw_delta(kw, kb, sigw, sigb):
        dw = (sigw * jax.random.normal(kw, sigw.shape, jnp.float32)).astype(jnp.bfloat16)
        db = sigb * jax.random.normal(kb, sigb.shape, jnp.float32)
        return dw, db

    dw1, db1 = draw_delta(k_ew1, k_eb1, sigw1, sigb1)
    dw2, db2 = draw_delta(k_ew2, k_eb2, sigw2, sigb2)
    dw3, db3 = draw_delta(k_ew3, k_eb3, sigw3, sigb3)

    # Pack the six (DPAD,) bias vectors into one sublane-aligned (8, DPAD) block.
    bias_pack = jnp.pad(
        jnp.stack([mub1, db1, mub2, db2, mub3, db3], axis=0),
        ((0, 2), (0, 0))).astype(jnp.float32)

    # ---- Input: flatten, zero-pad 784 -> 896, fold Dropout(0.2), cast bf16.
    x = X.reshape(B, -1).astype(jnp.float32)
    x = jnp.pad(x, ((0, 0), (0, DIN_PAD - DIN)))
    scale = 1.0 / (1.0 - DROPOUT_P)
    if training:
        keep1 = jax.random.bernoulli(k_d1, 1.0 - DROPOUT_P, x.shape).astype(jnp.float32)
        x = x * keep1 * scale
    x_bf = x.astype(jnp.bfloat16)
    s_in1 = jax.random.rademacher(k_s1, x.shape, jnp.float32).astype(jnp.bfloat16)
    xs_bf = x_bf * s_in1                         # sign flip is exact in bf16

    # ---- Packed per-sample multipliers: [sign_out1 | m2 | sign_out2 | m3 | sign_out3]
    # m = keep/(1-p) * sign_in (values in {0, +-1.25}, exact in bf16); eval -> sign_in.
    so_all = jax.random.rademacher(k_pm, (B, 5 * DPAD), jnp.float32)
    if training:
        keep2 = jax.random.bernoulli(k_d2, 1.0 - DROPOUT_P, (B, DPAD)).astype(jnp.float32) * scale
        keep3 = jax.random.bernoulli(k_d3, 1.0 - DROPOUT_P, (B, DPAD)).astype(jnp.float32) * scale
        ones = jnp.ones((B, DPAD), jnp.float32)
        so_all = so_all * jnp.concatenate([ones, keep2, ones, keep3, ones], axis=1)
    pm = so_all.astype(jnp.bfloat16)

    # ---- Grid / tiling.
    bb = _choose_bb(B)
    num_tiles = B // bb

    kernel = functools.partial(_fused_pmnist_flipout_kernel, training=training)

    per_sample = lambda cols: pl.BlockSpec((bb, cols), lambda i: (i, 0))
    resident = lambda rows: pl.BlockSpec((rows, DPAD), lambda i: (0, 0))

    grid_spec = pltpu.PrefetchScalarGridSpec(
        num_scalar_prefetch=0,
        grid=(num_tiles,),
        in_specs=[
            per_sample(DIN_PAD),                     # x (dropout folded)
            per_sample(DIN_PAD),                     # x * sign_in (layer 1)
            per_sample(5 * DPAD),                    # packed per-sample multipliers
            resident(DIN_PAD), resident(DIN_PAD),    # layer 1: mu_W, delta_W
            resident(DPAD), resident(DPAD),          # layer 2: mu_W, delta_W
            resident(DPAD), resident(DPAD),          # layer 3: mu_W, delta_W
            pl.BlockSpec((8, DPAD), lambda i: (0, 0)),   # packed biases
        ],
        out_specs=pl.BlockSpec((bb, DPAD), lambda i: (i, 0)),
    )

    flops = 2 * B * DPAD * (2 * DIN_PAD + 4 * DPAD)
    bytes_accessed = (2 * B * DIN_PAD * 2          # x + xs (bf16)
                      + B * 5 * DPAD * 2           # packed multipliers
                      + B * DPAD * 4               # output (f32)
                      + 2 * DIN_PAD * DPAD * 2     # layer-1 weights
                      + 4 * DPAD * DPAD * 2        # layer-2/3 weights
                      + 8 * DPAD * 4)              # biases
    cost = pl.CostEstimate(flops=flops, transcendentals=0,
                           bytes_accessed=bytes_accessed)

    out_pad = pl.pallas_call(
        kernel,
        out_shape=jax.ShapeDtypeStruct((B, DPAD), jnp.float32),
        grid_spec=grid_spec,
        compiler_params=pltpu.CompilerParams(
            dimension_semantics=("parallel",)),
        cost_estimate=cost,
    )(x_bf, xs_bf, pm, muw1, dw1, muw2, dw2, muw3, dw3, bias_pack)

    return out_pad[:, :NOUT]                          # drop lane padding


# ----------------------------------------------------------------------------
# Parameter construction (deterministic, mimicking bayesian-torch defaults:
# mu ~ N(0, 0.1), rho ~ N(-3, 0.1)).  Weights are stored as (in, out) so the
# kernel computes x @ W directly (transpose of torch's (out, in) layout).
# ----------------------------------------------------------------------------
def _init_flipout_params(key, din, dout):
    kw, kb, krw, krb = jax.random.split(key, 4)
    mu_w = 0.1 * jax.random.normal(kw, (din, dout), jnp.float32)
    rho_w = -3.0 + 0.1 * jax.random.normal(krw, (din, dout), jnp.float32)
    mu_b = 0.1 * jax.random.normal(kb, (dout,), jnp.float32)
    rho_b = -3.0 + 0.1 * jax.random.normal(krb, (dout,), jnp.float32)
    return mu_w, rho_w, mu_b, rho_b


def _pack_layer(mu_w, rho_w, mu_b, rho_b, din_pad):
    """Zero-pad to (din_pad, DPAD); cast mu_W to bf16; precompute sigma = softplus(rho)
    (padded sigma == 0, so padded columns/rows contribute exactly zero)."""
    din, dout = mu_w.shape
    pr, pc = din_pad - din, DPAD - dout
    muw = jnp.pad(mu_w, ((0, pr), (0, pc))).astype(jnp.bfloat16)
    sigw = jnp.pad(jax.nn.softplus(rho_w), ((0, pr), (0, pc))).astype(jnp.float32)
    mub = jnp.pad(mu_b, (0, pc)).astype(jnp.float32)
    sigb = jnp.pad(jax.nn.softplus(rho_b), (0, pc)).astype(jnp.float32)
    return muw, sigw, mub, sigb


def pack_params(raw_params):
    l1, l2, l3 = raw_params
    return (_pack_layer(*l1, DIN_PAD),
            _pack_layer(*l2, DPAD),
            _pack_layer(*l3, DPAD))


if __name__ == "__main__":
    root = jax.random.PRNGKey(0)
    k_x, k1, k2, k3, k_noise = jax.random.split(root, 5)

    B = 8
    X = jax.random.normal(k_x, (B, 1, 28, 28), jnp.float32)   # NCHW like PyTorch

    raw_params = [
        _init_flipout_params(k1, DIN, HID),   # dense1: 784 -> 100
        _init_flipout_params(k2, HID, HID),   # dense2: 100 -> 100
        _init_flipout_params(k3, HID, NOUT),  # dense3: 100 -> 10
    ]
    packed = pack_params(raw_params)

    # Eval-mode forward (nn.Dropout is identity; flipout noise still applied).
    out_eval = nonadaptive_dropout_pmnist_forward(X, packed, k_noise, training=False)
    out_eval = jax.block_until_ready(out_eval)
    assert out_eval.shape == (B, NOUT) and out_eval.dtype == jnp.float32
    assert bool(jnp.all(jnp.isfinite(out_eval)))

    # Train-mode forward (inverted dropout masks folded into the kernel inputs).
    out_train = nonadaptive_dropout_pmnist_forward(
        X, packed, jax.random.fold_in(k_noise, 1), training=True)
    out_train = jax.block_until_ready(out_train)
    assert out_train.shape == (B, NOUT)
    assert bool(jnp.all(jnp.isfinite(out_train)))

    print("KERNEL_OK")
</pallas_src>

<mosaic_0001>
module attributes {stable_mosaic.version = 11 : i64} {
  func.func @_fused_pmnist_flipout_kernel(%arg0: i32, %arg1: memref<8x896xbf16, #tpu.memory_space<vmem>>, %arg2: memref<8x896xbf16, #tpu.memory_space<vmem>>, %arg3: memref<8x640xbf16, #tpu.memory_space<vmem>>, %arg4: memref<896x128xbf16, #tpu.memory_space<vmem>>, %arg5: memref<896x128xbf16, #tpu.memory_space<vmem>>, %arg6: memref<128x128xbf16, #tpu.memory_space<vmem>>, %arg7: memref<128x128xbf16, #tpu.memory_space<vmem>>, %arg8: memref<128x128xbf16, #tpu.memory_space<vmem>>, %arg9: memref<128x128xbf16, #tpu.memory_space<vmem>>, %arg10: memref<8x128xf32, #tpu.memory_space<vmem>>, %arg11: memref<8x128xf32, #tpu.memory_space<vmem>>) attributes {dimension_semantics = [#tpu.dimension_semantics<parallel>], iteration_bounds = array<i64: 1>, scalar_prefetch = 0 : i64, scratch_operands = 0 : i64, tpu.core_type = #tpu.core_type<tc>, window_params = [{transform_indices = @transform_0, window_bounds = array<i64: 8, 896>}, {transform_indices = @transform_1, window_bounds = array<i64: 8, 896>}, {transform_indices = @transform_2, window_bounds = array<i64: 8, 640>}, {pipeline_mode = #tpu.pipeline_mode<synchronous>, transform_indices = @transform_3, window_bounds = array<i64: 896, 128>}, {pipeline_mode = #tpu.pipeline_mode<synchronous>, transform_indices = @transform_4, window_bounds = array<i64: 896, 128>}, {pipeline_mode = #tpu.pipeline_mode<synchronous>, transform_indices = @transform_5, window_bounds = array<i64: 128, 128>}, {pipeline_mode = #tpu.pipeline_mode<synchronous>, transform_indices = @transform_6, window_bounds = array<i64: 128, 128>}, {pipeline_mode = #tpu.pipeline_mode<synchronous>, transform_indices = @transform_7, window_bounds = array<i64: 128, 128>}, {pipeline_mode = #tpu.pipeline_mode<synchronous>, transform_indices = @transform_8, window_bounds = array<i64: 128, 128>}, {pipeline_mode = #tpu.pipeline_mode<synchronous>, transform_indices = @transform_9, window_bounds = array<i64: 8, 128>}, {transform_indices = @transform_10, window_bounds = array<i64: 8, 128>}]} {
    %c0 = arith.constant 0 : index
    %c0_0 = arith.constant 0 : index
    %0 = vector.load %arg3[%c0, %c0_0] : memref<8x640xbf16, #tpu.memory_space<vmem>>, vector<8x640xbf16>
    %1 = vector.extract_strided_slice %0 {offsets = [0, 0], sizes = [8, 128], strides = [1, 1]} : vector<8x640xbf16> to vector<8x128xbf16>
    %2 = arith.extf %1 : vector<8x128xbf16> to vector<8x128xf32>
    %3 = vector.extract_strided_slice %0 {offsets = [0, 128], sizes = [8, 128], strides = [1, 1]} : vector<8x640xbf16> to vector<8x128xbf16>
    %4 = arith.extf %3 : vector<8x128xbf16> to vector<8x128xf32>
    %5 = vector.extract_strided_slice %0 {offsets = [0, 256], sizes = [8, 128], strides = [1, 1]} : vector<8x640xbf16> to vector<8x128xbf16>
    %6 = arith.extf %5 : vector<8x128xbf16> to vector<8x128xf32>
    %7 = vector.extract_strided_slice %0 {offsets = [0, 384], sizes = [8, 128], strides = [1, 1]} : vector<8x640xbf16> to vector<8x128xbf16>
    %8 = arith.extf %7 : vector<8x128xbf16> to vector<8x128xf32>
    %9 = vector.extract_strided_slice %0 {offsets = [0, 512], sizes = [8, 128], strides = [1, 1]} : vector<8x640xbf16> to vector<8x128xbf16>
    %10 = arith.extf %9 : vector<8x128xbf16> to vector<8x128xf32>
    %c0_1 = arith.constant 0 : index
    %c0_2 = arith.constant 0 : index
    %11 = vector.load %arg10[%c0_1, %c0_2] : memref<8x128xf32, #tpu.memory_space<vmem>>, vector<1x128xf32>
    %c1 = arith.constant 1 : index
    %c0_3 = arith.constant 0 : index
    %12 = vector.load %arg10[%c1, %c0_3] : memref<8x128xf32, #tpu.memory_space<vmem>>, vector<1x128xf32>
    %c2 = arith.constant 2 : index
    %c0_4 = arith.constant 0 : index
    %13 = vector.load %arg10[%c2, %c0_4] : memref<8x128xf32, #tpu.memory_space<vmem>>, vector<1x128xf32>
    %c3 = arith.constant 3 : index
    %c0_5 = arith.constant 0 : index
    %14 = vector.load %arg10[%c3, %c0_5] : memref<8x128xf32, #tpu.memory_space<vmem>>, vector<1x128xf32>
    %c4 = arith.constant 4 : index
    %c0_6 = arith.constant 0 : index
    %15 = vector.load %arg10[%c4, %c0_6] : memref<8x128xf32, #tpu.memory_space<vmem>>, vector<1x128xf32>
    %c5 = arith.constant 5 : index
    %c0_7 = arith.constant 0 : index
    %16 = vector.load %arg10[%c5, %c0_7] : memref<8x128xf32, #tpu.memory_space<vmem>>, vector<1x128xf32>
    %c0_8 = arith.constant 0 : index
    %c0_9 = arith.constant 0 : index
    %17 = vector.load %arg1[%c0_8, %c0_9] : memref<8x896xbf16, #tpu.memory_space<vmem>>, vector<8x896xbf16>
    %c0_10 = arith.constant 0 : index
    %c0_11 = arith.constant 0 : index
    %18 = vector.load %arg4[%c0_10, %c0_11] : memref<896x128xbf16, #tpu.memory_space<vmem>>, vector<896x128xbf16>
    %cst = arith.constant dense<0.000000e+00> : vector<8x128xf32>
    %19 = tpu.matmul %17, %18, %cst {dimension_numbers = #tpu.dot_dimension_numbers<[1], [0], [0], [1], [0, 0, 1, 1], [], []>} : vector<8x896xbf16>, vector<896x128xbf16>, vector<8x128xf32> -> vector<8x128xf32>
    %20 = vector.broadcast %11 : vector<1x128xf32> to vector<8x128xf32>
    %21 = arith.addf %19, %20 : vector<8x128xf32>
    %c0_12 = arith.constant 0 : index
    %c0_13 = arith.constant 0 : index
    %22 = vector.load %arg2[%c0_12, %c0_13] : memref<8x896xbf16, #tpu.memory_space<vmem>>, vector<8x896xbf16>
    %c0_14 = arith.constant 0 : index
    %c0_15 = arith.constant 0 : index
    %23 = vector.load %arg5[%c0_14, %c0_15] : memref<896x128xbf16, #tpu.memory_space<vmem>>, vector<896x128xbf16>
    %cst_16 = arith.constant dense<0.000000e+00> : vector<8x128xf32>
    %24 = tpu.matmul %22, %23, %cst_16 {dimension_numbers = #tpu.dot_dimension_numbers<[1], [0], [0], [1], [0, 0, 1, 1], [], []>} : vector<8x896xbf16>, vector<896x128xbf16>, vector<8x128xf32> -> vector<8x128xf32>
    %25 = vector.broadcast %12 : vector<1x128xf32> to vector<8x128xf32>
    %26 = arith.addf %24, %25 : vector<8x128xf32>
    %27 = arith.mulf %26, %2 : vector<8x128xf32>
    %28 = arith.addf %21, %27 : vector<8x128xf32>
    %cst_17 = arith.constant 0.000000e+00 : f32
    %29 = vector.broadcast %cst_17 : f32 to vector<8x128xf32>
    %30 = arith.maximumf %28, %29 : vector<8x128xf32>
    %31 = arith.mulf %30, %4 : vector<8x128xf32>
    %32 = arith.truncf %31 : vector<8x128xf32> to vector<8x128xbf16>
    %33 = arith.truncf %30 : vector<8x128xf32> to vector<8x128xbf16>
    %c0_18 = arith.constant 0 : index
    %c0_19 = arith.constant 0 : index
    %34 = vector.load %arg6[%c0_18, %c0_19] : memref<128x128xbf16, #tpu.memory_space<vmem>>, vector<128x128xbf16>
    %cst_20 = arith.constant dense<0.000000e+00> : vector<8x128xf32>
    %35 = tpu.matmul %33, %34, %cst_20 {dimension_numbers = #tpu.dot_dimension_numbers<[1], [0], [0], [1], [0, 0, 1, 1], [], []>} : vector<8x128xbf16>, vector<128x128xbf16>, vector<8x128xf32> -> vector<8x128xf32>
    %36 = vector.broadcast %13 : vector<1x128xf32> to vector<8x128xf32>
    %37 = arith.addf %35, %36 : vector<8x128xf32>
    %c0_21 = arith.constant 0 : index
    %c0_22 = arith.constant 0 : index
    %38 = vector.load %arg7[%c0_21, %c0_22] : memref<128x128xbf16, #tpu.memory_space<vmem>>, vector<128x128xbf16>
    %cst_23 = arith.constant dense<0.000000e+00> : vector<8x128xf32>
    %39 = tpu.matmul %32, %38, %cst_23 {dimension_numbers = #tpu.dot_dimension_numbers<[1], [0], [0], [1], [0, 0, 1, 1], [], []>} : vector<8x128xbf16>, vector<128x128xbf16>, vector<8x128xf32> -> vector<8x128xf32>
    %40 = vector.broadcast %14 : vector<1x128xf32> to vector<8x128xf32>
    %41 = arith.addf %39, %40 : vector<8x128xf32>
    %42 = arith.mulf %41, %6 : vector<8x128xf32>
    %43 = arith.addf %37, %42 : vector<8x128xf32>
    %cst_24 = arith.constant 0.000000e+00 : f32
    %44 = vector.broadcast %cst_24 : f32 to vector<8x128xf32>
    %45 = arith.maximumf %43, %44 : vector<8x128xf32>
    %46 = arith.mulf %45, %8 : vector<8x128xf32>
    %47 = arith.truncf %46 : vector<8x128xf32> to vector<8x128xbf16>
    %48 = arith.truncf %45 : vector<8x128xf32> to vector<8x128xbf16>
    %c0_25 = arith.constant 0 : index
    %c0_26 = arith.constant 0 : index
    %49 = vector.load %arg8[%c0_25, %c0_26] : memref<128x128xbf16, #tpu.memory_space<vmem>>, vector<128x128xbf16>
    %cst_27 = arith.constant dense<0.000000e+00> : vector<8x128xf32>
    %50 = tpu.matmul %48, %49, %cst_27 {dimension_numbers = #tpu.dot_dimension_numbers<[1], [0], [0], [1], [0, 0, 1, 1], [], []>} : vector<8x128xbf16>, vector<128x128xbf16>, vector<8x128xf32> -> vector<8x128xf32>
    %51 = vector.broadcast %15 : vector<1x128xf32> to vector<8x128xf32>
    %52 = arith.addf %50, %51 : vector<8x128xf32>
    %c0_28 = arith.constant 0 : index
    %c0_29 = arith.constant 0 : index
    %53 = vector.load %arg9[%c0_28, %c0_29] : memref<128x128xbf16, #tpu.memory_space<vmem>>, vector<128x128xbf16>
    %cst_30 = arith.constant dense<0.000000e+00> : vector<8x128xf32>
    %54 = tpu.matmul %47, %53, %cst_30 {dimension_numbers = #tpu.dot_dimension_numbers<[1], [0], [0], [1], [0, 0, 1, 1], [], []>} : vector<8x128xbf16>, vector<128x128xbf16>, vector<8x128xf32> -> vector<8x128xf32>
    %55 = vector.broadcast %16 : vector<1x128xf32> to vector<8x128xf32>
    %56 = arith.addf %54, %55 : vector<8x128xf32>
    %57 = arith.mulf %56, %10 : vector<8x128xf32>
    %58 = arith.addf %52, %57 : vector<8x128xf32>
    %c0_31 = arith.constant 0 : index
    %c0_32 = arith.constant 0 : index
    %59 = vector.load %arg11[%c0_31, %c0_32] : memref<8x128xf32, #tpu.memory_space<vmem>>, vector<8x128xf32>
    tpu.vector_store %arg11[%c0_31, %c0_32], %58 {strides = array<i32>} : memref<8x128xf32, #tpu.memory_space<vmem>>, vector<8x128xf32>,
    return
  }
  func.func @transform_0(%arg0: i32) -> (i32, i32) {
    %c0_i32 = arith.constant 0 : i32
    %c0_i32_0 = arith.constant 0 : i32
    return %arg0, %c0_i32 : i32, i32
  }
  func.func @transform_1(%arg0: i32) -> (i32, i32) {
    %c0_i32 = arith.constant 0 : i32
    %c0_i32_0 = arith.constant 0 : i32
    return %arg0, %c0_i32 : i32, i32
  }
  func.func @transform_2(%arg0: i32) -> (i32, i32) {
    %c0_i32 = arith.constant 0 : i32
    %c0_i32_0 = arith.constant 0 : i32
    return %arg0, %c0_i32 : i32, i32
  }
  func.func @transform_3(%arg0: i32) -> (i32, i32) {
    %c0_i32 = arith.constant 0 : i32
    %c0_i32_0 = arith.constant 0 : i32
    %c0_i32_1 = arith.constant 0 : i32
    return %c0_i32, %c0_i32_0 : i32, i32
  }
  func.func @transform_4(%arg0: i32) -> (i32, i32) {
    %c0_i32 = arith.constant 0 : i32
    %c0_i32_0 = arith.constant 0 : i32
    %c0_i32_1 = arith.constant 0 : i32
    return %c0_i32, %c0_i32_0 : i32, i32
  }
  func.func @transform_5(%arg0: i32) -> (i32, i32) {
    %c0_i32 = arith.constant 0 : i32
    %c0_i32_0 = arith.constant 0 : i32
    %c0_i32_1 = arith.constant 0 : i32
    return %c0_i32, %c0_i32_0 : i32, i32
  }
  func.func @transform_6(%arg0: i32) -> (i32, i32) {
    %c0_i32 = arith.constant 0 : i32
    %c0_i32_0 = arith.constant 0 : i32
    %c0_i32_1 = arith.constant 0 : i32
    return %c0_i32, %c0_i32_0 : i32, i32
  }
  func.func @transform_7(%arg0: i32) -> (i32, i32) {
    %c0_i32 = arith.constant 0 : i32
    %c0_i32_0 = arith.constant 0 : i32
    %c0_i32_1 = arith.constant 0 : i32
    return %c0_i32, %c0_i32_0 : i32, i32
  }
  func.func @transform_8(%arg0: i32) -> (i32, i32) {
    %c0_i32 = arith.constant 0 : i32
    %c0_i32_0 = arith.constant 0 : i32
    %c0_i32_1 = arith.constant 0 : i32
    return %c0_i32, %c0_i32_0 : i32, i32
  }
  func.func @transform_9(%arg0: i32) -> (i32, i32) {
    %c0_i32 = arith.constant 0 : i32
    %c0_i32_0 = arith.constant 0 : i32
    %c0_i32_1 = arith.constant 0 : i32
    return %c0_i32, %c0_i32_0 : i32, i32
  }
  func.func @transform_10(%arg0: i32) -> (i32, i32) {
    %c0_i32 = arith.constant 0 : i32
    %c0_i32_0 = arith.constant 0 : i32
    return %arg0, %c0_i32 : i32, i32
  }
}

</mosaic_0001>

<bundles_post_ra>
// kernel: nonadaptive_dropout_pmnist_forward.3
= control target key start
LH: loop header
LB: loop body
LE: loop exit
PB: predicated region body
PF: predicated region fallthrough
CT: control target
= control target key end

     0   :  { %v2455_v42 = vmov 0.0   ;;  %vm2456_vm0 = vmmov 0   ;;  %s3068_s0 = inlined_call_operand.vmem [shape: bf16[8,896], index: 0, kind: input, shape index: {}]   ;;  %s3069_s1 = inlined_call_operand.vmem [shape: bf16[8,896], index: 1, kind: input, shape index: {}]   ;;  %s3070_s2 = inlined_call_operand.vmem [shape: bf16[8,640], index: 2, kind: input, shape index: {}]   ;;  %s3071_s3 = inlined_call_operand.vmem [shape: bf16[896,128], index: 3, kind: input, shape index: {}]   ;;  %s3072_s4 = inlined_call_operand.vmem [shape: bf16[896,128], index: 4, kind: input, shape index: {}]   ;;  %s3073_s5 = inlined_call_operand.vmem [shape: bf16[128,128], index: 5, kind: input, shape index: {}]   ;;  %s3074_s6 = inlined_call_operand.vmem [shape: bf16[128,128], index: 6, kind: input, shape index: {}]   ;;  %s3075_s7 = inlined_call_operand.vmem [shape: bf16[128,128], index: 7, kind: input, shape index: {}]   ;;  %s3076_s8 = inlined_call_operand.vmem [shape: bf16[128,128], index: 8, kind: input, shape index: {}]   ;;  %s3077_s9 = inlined_call_operand.vmem [shape: f32[8,128], index: 9, kind: input, shape index: {}]   ;;  %s3078_s10 = inlined_call_operand.hbm [shape: f32[8,128], index: 10, kind: output, shape index: {}]  }
   0x1   :  { %v2273_v0 = vld [vmem:[%s3071_s3 + $0x40] sm:$0xff]   ;;  %v2277_v4 = vld [vmem:[%s3071_s3 + $0x48] sm:$0xff]   ;;  %v2281_v8 = vld [vmem:[%s3071_s3 + $0x50] sm:$0xff]  }
   0x2   :  { %v2274_v1 = vld [vmem:[%s3071_s3] sm:$0xff]   ;;  %1964 = vmatprep.subr.bf16.mxu0 %v2273_v0  ;;  %v2278_v5 = vld [vmem:[%s3071_s3 + $0x8] sm:$0xff]   ;;  %v2282_v9 = vld [vmem:[%s3071_s3 + $0x10] sm:$0xff]  }
   0x3   :  { %v2275_v2 = vld [vmem:[%s3071_s3 + $0xc0] sm:$0xff]   ;;  %1965 = vmatpush3.bf16.msra.mxu0 %v2274_v1  ;;  %v2279_v6 = vld [vmem:[%s3071_s3 + $0xc8] sm:$0xff]   ;;  %v2283_v10 = vld [vmem:[%s3071_s3 + $0xd0] sm:$0xff]  }
   0x4   :  { %v2276_v3 = vld [vmem:[%s3071_s3 + $0x80] sm:$0xff]   ;;  %1986 = vmatprep.subr.bf16.mxu1 %v2275_v2  ;;  %1966 = vmatprep.subr.bf16.mxu0 %v2277_v4  ;;  %v2280_v7 = vld [vmem:[%s3071_s3 + $0x88] sm:$0xff]   ;;  %v2284_v11 = vld [vmem:[%s3071_s3 + $0x90] sm:$0xff]  }
   0x5   :  { %1987 = vmatpush3.bf16.msra.mxu1 %v2276_v3  ;;  %v2285_v12 = vld [vmem:[%s3071_s3 + $0x58] sm:$0xff]   ;;  %v2289_v16 = vld [vmem:[%s3071_s3 + $0x60] sm:$0xff]   ;;  %v2293_v20 = vld [vmem:[%s3071_s3 + $0x68] sm:$0xff]  }
   0x6   :  { %1988 = vmatprep.subr.bf16.mxu1 %v2279_v6  ;;  %v2286_v13 = vld [vmem:[%s3071_s3 + $0x18] sm:$0xff]   ;;  %v2290_v17 = vld [vmem:[%s3071_s3 + $0x20] sm:$0xff]   ;;  %v2294_v21 = vld [vmem:[%s3071_s3 + $0x28] sm:$0xff]  }
   0x7   :  { %1967 = vmatpush3.bf16.msra.mxu0 %v2278_v5  ;;  %v2287_v14 = vld [vmem:[%s3071_s3 + $0xd8] sm:$0xff]   ;;  %v2291_v18 = vld [vmem:[%s3071_s3 + $0xe0] sm:$0xff]   ;;  %v2295_v22 = vld [vmem:[%s3071_s3 + $0xe8] sm:$0xff]  }
   0x8   :  { %1968 = vmatprep.subr.bf16.mxu0 %v2281_v8  ;;  %v2288_v15 = vld [vmem:[%s3071_s3 + $0x98] sm:$0xff]   ;;  %v2292_v19 = vld [vmem:[%s3071_s3 + $0xa0] sm:$0xff]   ;;  %v2296_v23 = vld [vmem:[%s3071_s3 + $0xa8] sm:$0xff]  }
   0x9   :  { %1989 = vmatpush3.bf16.msra.mxu1 %v2280_v7  ;;  %v2297_v24 = vld [vmem:[%s3071_s3 + $0x70] sm:$0xff]   ;;  %v2301_v28 = vld [vmem:[%s3071_s3 + $0x78] sm:$0xff]   ;;  %v57_v31 = vld [vmem:[%s3068_s0] sm:$0xff] }
   0xa   :  { %1990 = vmatprep.subr.bf16.mxu1 %v2283_v10  ;;  %v2298_v25 = vld [vmem:[%s3071_s3 + $0x30] sm:$0xff]   ;;  %v2302_v29 = vld [vmem:[%s3071_s3 + $0x38] sm:$0xff]   ;;  %v1801_v32 = vcombine.low %v57_v31, %v57_v31  ;;  %v1802_v33 = vcombine.high %v57_v31, %v57_v31  ;;  %v2307_v35 = vld [vmem:[%s3071_s3 + $0x140] sm:$0xff]  }
   0xb   :  { %1969 = vmatpush3.bf16.msra.mxu0 %v2282_v9  ;;  %v2299_v26 = vld [vmem:[%s3071_s3 + $0xf0] sm:$0xff]   ;;  %v2303_v30 = vld [vmem:[%s3071_s3 + $0xf8] sm:$0xff]   ;;  %v58_v36 = vld [vmem:[%s3068_s0 + $0x8] sm:$0xff] }
   0xc   :  { %1970 = vmatprep.subr.bf16.mxu0 %v2285_v12  ;;  %v2300_v27 = vld [vmem:[%s3071_s3 + $0xb0] sm:$0xff]   ;;  %v2306_v34 = vld [vmem:[%s3071_s3 + $0xb8] sm:$0xff]   ;;  %570 = vmatprep.mubr.bf16.mxu0 %v1802_v33  ;;  %v1803_v37 = vcombine.low %v58_v36, %v58_v36  ;;  %v1804_v38 = vcombine.high %v58_v36, %v58_v36  ;;  %v2310_v39 = vld [vmem:[%s3071_s3 + $0x100] sm:$0xff]  }
   0xd   :  { %1991 = vmatpush3.bf16.msra.mxu1 %v2284_v11  ;;  %v2311_v40 = vld [vmem:[%s3071_s3 + $0x180] sm:$0xff]   ;;  %v2312_v41 = vld [vmem:[%s3071_s3 + $0x148] sm:$0xff]   ;;  %v2315_v45 = vld [vmem:[%s3071_s3 + $0x150] sm:$0xff]  }
   0xe   :  { %1992 = vmatprep.subr.bf16.mxu1 %v2287_v14  ;;  %610 = vmatprep.mubr.bf16.mxu1 %v1804_v38  ;;  %v2313_v43 = vld [vmem:[%s3071_s3 + $0x108] sm:$0xff]   ;;  %v2316_v46 = vld [vmem:[%s3071_s3 + $0x110] sm:$0xff]   ;;  %v2318_v48 = vld [vmem:[%s3071_s3 + $0x158] sm:$0xff]  }
   0xf   :  { %1971 = vmatpush3.bf16.msra.mxu0 %v2286_v13  ;;  %v2314_v44 = vld [vmem:[%s3071_s3 + $0x188] sm:$0xff]   ;;  %v2317_v47 = vld [vmem:[%s3071_s3 + $0x190] sm:$0xff]   ;;  %v2319_v49 = vld [vmem:[%s3071_s3 + $0x118] sm:$0xff]  }
  0x10   :  { %1972 = vmatprep.subr.bf16.mxu0 %v2289_v16  ;;  %v2321_v50 = vld [vmem:[%s3071_s3 + $0x160] sm:$0xff]   ;;  %v2320_v51 = vld [vmem:[%s3071_s3 + $0x198] sm:$0xff]   ;;  %v2324_v53 = vld [vmem:[%s3071_s3 + $0x168] sm:$0xff]  }
  0x11   :  { %1993 = vmatpush3.bf16.msra.mxu1 %v2288_v15  ;;  %v2322_v52 = vld [vmem:[%s3071_s3 + $0x120] sm:$0xff]   ;;  %v2325_v55 = vld [vmem:[%s3071_s3 + $0x128] sm:$0xff]   ;;  %v2327_v56 = vld [vmem:[%s3071_s3 + $0x170] sm:$0xff]  }
  0x12   :  { %1994 = vmatprep.subr.bf16.mxu1 %v2291_v18  ;;  %v2323_v54 = vld [vmem:[%s3071_s3 + $0x1a0] sm:$0xff]   ;;  %v2326_v57 = vld [vmem:[%s3071_s3 + $0x1a8] sm:$0xff]   ;;  %v59_v58 = vld [vmem:[%s3068_s0 + $0x10] sm:$0xff] }
  0x13   :  { %1973 = vmatpush3.bf16.msra.mxu0 %v2290_v17  ;;  %v2328_v59 = vld [vmem:[%s3071_s3 + $0x130] sm:$0xff]   ;;  %v1806_v60 = vcombine.high %v59_v58, %v59_v58  ;;  %v2330_v61 = vld [vmem:[%s3071_s3 + $0x178] sm:$0xff]   ;;  %v2335_v1 = vld [vmem:[%s3072_s4 + $0x40] sm:$0xff]   ;;  %v1805_v4 = vcombine.low %v59_v58, %v59_v58 }
  0x14   :  { %1974 = vmatprep.subr.bf16.mxu0 %v2293_v20  ;;  %v2329_v62 = vld [vmem:[%s3071_s3 + $0x1b0] sm:$0xff]   ;;  %v2331_v63 = vld [vmem:[%s3071_s3 + $0x138] sm:$0xff]   ;;  %v2336_v2 = vld [vmem:[%s3072_s4] sm:$0xff]  }
  0x15   :  { %1995 = vmatpush3.bf16.msra.mxu1 %v2292_v19  ;;  %v2334_v0 = vld [vmem:[%s3071_s3 + $0x1b8] sm:$0xff]   ;;  %v2337_v3 = vld [vmem:[%s3072_s4 + $0xc0] sm:$0xff]   ;;  %v2340_v7 = vld [vmem:[%s3072_s4 + $0x48] sm:$0xff]  }
  0x16   :  { %1996 = vmatprep.subr.bf16.mxu1 %v2295_v22  ;;  %v2338_v5 = vld [vmem:[%s3068_s0 + $0x18] ss:$0 sps:$4 sm:$0xff]   ;;  %v2339_v6 = vld [vmem:[%s3072_s4 + $0x80] sm:$0xff]   ;;  %v2341_v8 = vld [vmem:[%s3072_s4 + $0x8] sm:$0xff]  }
  0x17   :  { %1975 = vmatpush3.bf16.msra.mxu0 %v2294_v21  ;;  %v2342_v9 = vld [vmem:[%s3072_s4 + $0xc8] sm:$0xff]   ;;  %v2344_v11 = vld [vmem:[%s3072_s4 + $0x50] sm:$0xff]   ;;  %v2348_v15 = vld [vmem:[%s3072_s4 + $0x58] sm:$0xff]  }
  0x18   :  { %1976 = vmatprep.subr.bf16.mxu0 %v2297_v24  ;;  %v2343_v10 = vld [vmem:[%s3072_s4 + $0x88] sm:$0xff]   ;;  %v2345_v12 = vld [vmem:[%s3072_s4 + $0x10] sm:$0xff]   ;;  %v2349_v16 = vld [vmem:[%s3072_s4 + $0x18] sm:$0xff]  }
  0x19   :  { %1997 = vmatpush3.bf16.msra.mxu1 %v2296_v23  ;;  %v2346_v13 = vld [vmem:[%s3072_s4 + $0xd0] sm:$0xff]   ;;  %v2350_v17 = vld [vmem:[%s3072_s4 + $0xd8] sm:$0xff]   ;;  %v2352_v19 = vld [vmem:[%s3072_s4 + $0x60] sm:$0xff]  }
  0x1a   :  { %1998 = vmatprep.subr.bf16.mxu1 %v2299_v26  ;;  %v2347_v14 = vld [vmem:[%s3072_s4 + $0x90] sm:$0xff]   ;;  %v2351_v18 = vld [vmem:[%s3072_s4 + $0x98] sm:$0xff]   ;;  %v2353_v20 = vld [vmem:[%s3072_s4 + $0x20] sm:$0xff]  }
  0x1b   :  { %1977 = vmatpush3.bf16.msra.mxu0 %v2298_v25  ;;  %v2354_v21 = vld [vmem:[%s3072_s4 + $0xe0] sm:$0xff]   ;;  %v2356_v23 = vld [vmem:[%s3072_s4 + $0x68] sm:$0xff]   ;;  %v2365_v36 = vld [vmem:[%s3072_s4 + $0x38] sm:$0xff]  }
  0x1c   :  { %1978 = vmatprep.subr.bf16.mxu0 %v2301_v28  ;;  %v2355_v22 = vld [vmem:[%s3072_s4 + $0xa0] sm:$0xff]   ;;  %v2357_v24 = vld [vmem:[%s3072_s4 + $0x28] sm:$0xff]   ;;  %v2361_v28 = vld [vmem:[%s3072_s4 + $0x30] sm:$0xff]  }
  0x1d   :  { %1999 = vmatpush3.bf16.msra.mxu1 %v2300_v27  ;;  %v2358_v25 = vld [vmem:[%s3072_s4 + $0xe8] sm:$0xff]   ;;  %v2360_v27 = vld [vmem:[%s3072_s4 + $0x70] sm:$0xff]   ;;  %v698_v31 = vld [vmem:[%s3069_s1] sm:$0xff] }
  0x1e   :  { %2000 = vmatprep.subr.bf16.mxu1 %v2303_v30  ;;  %v2359_v26 = vld [vmem:[%s3072_s4 + $0xa8] sm:$0xff]   ;;  %v2363_v30 = vld [vmem:[%s3072_s4 + $0xb0] sm:$0xff]   ;;  %v1866_v33 = vcombine.high %v698_v31, %v698_v31  ;;  %v2370_v38 = vld [vmem:[%s3072_s4 + $0x140] sm:$0xff]  }
  0x1f   :  { %1979 = vmatpush3.bf16.msra.mxu0 %v2302_v29  ;;  %v2362_v29 = vld [vmem:[%s3072_s4 + $0xf0] sm:$0xff]  }
  0x20   :  { %2008 = vmatprep.subr.bf16.mxu0 %v2307_v35  ;;  %v699_v35 = vld [vmem:[%s3069_s1 + $0x8] sm:$0xff]  ;;  %v700_v58 = vld [vmem:[%s3069_s1 + $0x10] sm:$0xff] }
  0x21   :  { %2001 = vmatpush3.bf16.msra.mxu1 %v2306_v34  ;;  %v2366_v34 = vld [vmem:[%s3072_s4 + $0xf8] sm:$0xff]  }
  0x22   :  { %571 = vmatmul.mubr.bf16.vlgmr.msra.gmra.mrb[0].mxu0 %v1801_v32  ;;  %2150 = vmatprep.subr.bf16.mxu1 %v2455_v42  ;;  %v2364_v32 = vld [vmem:[%s3072_s4 + $0x78] sm:$0xff]  }
  0x23   :  { %2009 = vmatpush3.bf16.msra.mxu0 %v2310_v39  ;;  %650 = vmatprep.mubr.bf16.mxu0 %v1806_v60  ;;  %v2369_v39 = vld [vmem:[%s3072_s4 + $0xb8] sm:$0xff]   ;;  %v1870_v60 = vcombine.high %v700_v58, %v700_v58 }
  0x24   :  { %611 = vmatmul.mubr.bf16.vlgmr.msra.gmra.mrb[0].mxu1 %v1803_v37  ;;  %2010 = vmatprep.subr.bf16.mxu0 %v2312_v41  ;;  %v1868_v37 = vcombine.high %v699_v35, %v699_v35  ;;  %v2373_v41 = vld [vmem:[%s3072_s4 + $0x100] sm:$0xff]  }
  0x25   :  { %2151 = vmatpush3.bf16.msra.mxu1 %v2311_v40  ;;  %2166 = vmatprep.mubr.msk.bf16.mxu1 %vm2456_vm0, %v2455_v42  ;;  %v1865_v40 = vcombine.low %v698_v31, %v698_v31 }
  0x26   :  { %2152 = vmatprep.subr.bf16.mxu1 %v2455_v42 }
  0x27   :  { %2011 = vmatpush3.bf16.msra.mxu0 %v2313_v43  ;;  %v1867_v43 = vcombine.low %v699_v35, %v699_v35 }
  0x28   :  { %2012 = vmatprep.subr.bf16.mxu0 %v2315_v45  ;;  %v2374_v45 = vld [vmem:[%s3072_s4 + $0x180] sm:$0xff]  }
  0x29   :  { %2153 = vmatpush3.bf16.msra.mxu1 %v2314_v44  ;;  %v2375_v44 = vld [vmem:[%s3072_s4 + $0x148] sm:$0xff]  }
  0x2a   :  { %2154 = vmatprep.subr.bf16.mxu1 %v2455_v42 }
  0x2b   :  { %2013 = vmatpush3.bf16.msra.mxu0 %v2316_v46  ;;  %v2376_v46 = vld [vmem:[%s3072_s4 + $0x108] sm:$0xff]  }
  0x2c   :  { %2014 = vmatprep.subr.bf16.mxu0 %v2318_v48  ;;  %v2377_v48 = vld [vmem:[%s3072_s4 + $0x188] sm:$0xff]  }
  0x2d   :  { %2155 = vmatpush3.bf16.msra.mxu1 %v2317_v47  ;;  %v2378_v47 = vld [vmem:[%s3072_s4 + $0x150] sm:$0xff]  }
  0x2e   :  { %2156 = vmatprep.subr.bf16.mxu1 %v2455_v42 }
  0x2f   :  { %2015 = vmatpush3.bf16.msra.mxu0 %v2319_v49  ;;  %v2379_v49 = vld [vmem:[%s3072_s4 + $0x110] sm:$0xff]  }
  0x30   :  { %2016 = vmatprep.subr.bf16.mxu0 %v2321_v50  ;;  %v2381_v50 = vld [vmem:[%s3072_s4 + $0x158] sm:$0xff]  }
  0x31   :  { %2157 = vmatpush3.bf16.msra.mxu1 %v2320_v51  ;;  %v2380_v51 = vld [vmem:[%s3072_s4 + $0x190] sm:$0xff]  }
  0x32   :  { %2158 = vmatprep.subr.bf16.mxu1 %v2455_v42 }
  0x33   :  { %2017 = vmatpush3.bf16.msra.mxu0 %v2322_v52  ;;  %v2382_v52 = vld [vmem:[%s3072_s4 + $0x118] sm:$0xff]  }
  0x34   :  { %2018 = vmatprep.subr.bf16.mxu0 %v2324_v53  ;;  %v2384_v53 = vld [vmem:[%s3072_s4 + $0x160] sm:$0xff]  }
  0x35   :  { %2159 = vmatpush3.bf16.msra.mxu1 %v2323_v54  ;;  %v2383_v54 = vld [vmem:[%s3072_s4 + $0x198] sm:$0xff]  }
  0x36   :  { %2160 = vmatprep.subr.bf16.mxu1 %v2455_v42 }
  0x37   :  { %2019 = vmatpush3.bf16.msra.mxu0 %v2325_v55  ;;  %v2385_v55 = vld [vmem:[%s3072_s4 + $0x120] sm:$0xff]  }
  0x38   :  { %2020 = vmatprep.subr.bf16.mxu0 %v2327_v56  ;;  %v2386_v56 = vld [vmem:[%s3072_s4 + $0x1a0] sm:$0xff]  }
  0x39   :  { %2161 = vmatpush3.bf16.msra.mxu1 %v2326_v57  ;;  %v2387_v57 = vld [vmem:[%s3072_s4 + $0x168] sm:$0xff]  }
  0x3a   :  { %2162 = vmatprep.subr.bf16.mxu1 %v2455_v42 }
  0x3b   :  { %2021 = vmatpush3.bf16.msra.mxu0 %v2328_v59  ;;  %v2388_v59 = vld [vmem:[%s3072_s4 + $0x128] sm:$0xff]  }
  0x3c   :  { %2022 = vmatprep.subr.bf16.mxu0 %v2330_v61  ;;  %v2390_v61 = vld [vmem:[%s3072_s4 + $0x170] sm:$0xff]  }
  0x3d   :  { %2163 = vmatpush3.bf16.msra.mxu1 %v2329_v62  ;;  %v2389_v62 = vld [vmem:[%s3072_s4 + $0x1a8] sm:$0xff]  }
  0x3e   :  { %2164 = vmatprep.subr.bf16.mxu1 %v2455_v42 }
  0x3f   :  { %2023 = vmatpush3.bf16.msra.mxu0 %v2331_v63  ;;  %v2391_v63 = vld [vmem:[%s3072_s4 + $0x130] sm:$0xff]  }
  0x40   :  { %2039 = vmatprep.subr.bf16.mxu0 %v2335_v1  ;;  %v2392_v1 = vld [vmem:[%s3072_s4 + $0x1b0] sm:$0xff]  }
  0x41   :  { %2165 = vmatpush3.bf16.msra.mxu1 %v2334_v0  ;;  %v2393_v0 = vld [vmem:[%s3072_s4 + $0x178] sm:$0xff]  }
  0x42   :  { %651 = vmatmul.mubr.bf16.vlgmr.msra.gmra.mrb[4].mxu0 %v1805_v4  ;;  %2061 = vmatprep.subr.bf16.mxu1 %v2337_v3  ;;  %v2397_v3 = vld [vmem:[%s3072_s4 + $0x1b8] sm:$0xff]   ;;  %v1869_v4 = vcombine.low %v700_v58, %v700_v58 }
  0x43   :  { %2040 = vmatpush3.bf16.msra.mxu0 %v2336_v2  ;;  %1211 = vmatprep.mubr.bf16.mxu0 %v1866_v33  ;;  %v2394_v2 = vld [vmem:[%s3072_s4 + $0x138] sm:$0xff]  }
  0x44   :  { %2167 = vmatmul.mubr.bf16.vlgmr.msra.gmra.mrb[4].mxu1 %v2338_v5  ;;  %2041 = vmatprep.subr.bf16.mxu0 %v2340_v7  ;;  %v2398_v5 = vld [vmem:[%s3069_s1 + $0x18] ss:$0 sps:$4 sm:$0xff]  }
  0x45   :  { %2062 = vmatpush3.bf16.msra.mxu1 %v2339_v6  ;;  %1251 = vmatprep.mubr.bf16.mxu1 %v1868_v37 }
  0x46   :  { %2063 = vmatprep.subr.bf16.mxu1 %v2342_v9 }
  0x47   :  { %2042 = vmatpush3.bf16.msra.mxu0 %v2341_v8 }
  0x48   :  { %2043 = vmatprep.subr.bf16.mxu0 %v2344_v11 }
  0x49   :  { %2064 = vmatpush3.bf16.msra.mxu1 %v2343_v10 }
  0x4a   :  { %2065 = vmatprep.subr.bf16.mxu1 %v2346_v13 }
  0x4b   :  { %2044 = vmatpush3.bf16.msra.mxu0 %v2345_v12 }
  0x4c   :  { %2045 = vmatprep.subr.bf16.mxu0 %v2348_v15 }
  0x4d   :  { %2066 = vmatpush3.bf16.msra.mxu1 %v2347_v14 }
  0x4e   :  { %2067 = vmatprep.subr.bf16.mxu1 %v2350_v17 }
  0x4f   :  { %2046 = vmatpush3.bf16.msra.mxu0 %v2349_v16 }
  0x50   :  { %2047 = vmatprep.subr.bf16.mxu0 %v2352_v19 }
  0x51   :  { %2068 = vmatpush3.bf16.msra.mxu1 %v2351_v18 }
  0x52   :  { %2069 = vmatprep.subr.bf16.mxu1 %v2354_v21 }
  0x53   :  { %2048 = vmatpush3.bf16.msra.mxu0 %v2353_v20 }
  0x54   :  { %2049 = vmatprep.subr.bf16.mxu0 %v2356_v23 }
  0x55   :  { %2070 = vmatpush3.bf16.msra.mxu1 %v2355_v22 }
  0x56   :  { %2071 = vmatprep.subr.bf16.mxu1 %v2358_v25 }
  0x57   :  { %2050 = vmatpush3.bf16.msra.mxu0 %v2357_v24 }
  0x58   :  { %2051 = vmatprep.subr.bf16.mxu0 %v2360_v27 }
  0x59   :  { %2072 = vmatpush3.bf16.msra.mxu1 %v2359_v26 }
  0x5a   :  { %2073 = vmatprep.subr.bf16.mxu1 %v2362_v29 }
  0x5b   :  { %2052 = vmatpush3.bf16.msra.mxu0 %v2361_v28 }
  0x5c   :  { %2053 = vmatprep.subr.bf16.mxu0 %v2364_v32 }
  0x5d   :  { %2074 = vmatpush3.bf16.msra.mxu1 %v2363_v30 }
  0x5e   :  { %2075 = vmatprep.subr.bf16.mxu1 %v2366_v34 }
  0x5f   :  { %2054 = vmatpush3.bf16.msra.mxu0 %v2365_v36 }
  0x60   :  { %2083 = vmatprep.subr.bf16.mxu0 %v2370_v38 }
  0x61   :  { %2076 = vmatpush3.bf16.msra.mxu1 %v2369_v39 }
  0x62   :  { %1212 = vmatmul.mubr.bf16.vlgmr.msra.gmra.mrb[8].mxu0 %v1865_v40  ;;  %2170 = vmatprep.subr.bf16.mxu1 %v2455_v42 }
  0x63   :  { %2084 = vmatpush3.bf16.msra.mxu0 %v2373_v41  ;;  %1291 = vmatprep.mubr.bf16.mxu0 %v1870_v60 }
  0x64   :  { %1252 = vmatmul.mubr.bf16.vlgmr.msra.gmra.mrb[8].mxu1 %v1867_v43  ;;  %2085 = vmatprep.subr.bf16.mxu0 %v2375_v44 }
  0x65   :  { %2171 = vmatpush3.bf16.msra.mxu1 %v2374_v45  ;;  %2186 = vmatprep.mubr.msk.bf16.mxu1 %vm2456_vm0, %v2455_v42 }
  0x66   :  { %2172 = vmatprep.subr.bf16.mxu1 %v2455_v42 }
  0x67   :  { %2086 = vmatpush3.bf16.msra.mxu0 %v2376_v46 }
  0x68   :  { %2087 = vmatprep.subr.bf16.mxu0 %v2378_v47 }
  0x69   :  { %2173 = vmatpush3.bf16.msra.mxu1 %v2377_v48 }
  0x6a   :  { %2174 = vmatprep.subr.bf16.mxu1 %v2455_v42 }
  0x6b   :  { %2088 = vmatpush3.bf16.msra.mxu0 %v2379_v49 }
  0x6c   :  { %2089 = vmatprep.subr.bf16.mxu0 %v2381_v50 }
  0x6d   :  { %2175 = vmatpush3.bf16.msra.mxu1 %v2380_v51 }
  0x6e   :  { %2176 = vmatprep.subr.bf16.mxu1 %v2455_v42 }
  0x6f   :  { %2090 = vmatpush3.bf16.msra.mxu0 %v2382_v52 }
  0x70   :  { %2091 = vmatprep.subr.bf16.mxu0 %v2384_v53 }
  0x71   :  { %2177 = vmatpush3.bf16.msra.mxu1 %v2383_v54 }
  0x72   :  { %2178 = vmatprep.subr.bf16.mxu1 %v2455_v42 }
  0x73   :  { %2092 = vmatpush3.bf16.msra.mxu0 %v2385_v55 }
  0x74   :  { %2093 = vmatprep.subr.bf16.mxu0 %v2387_v57 }
  0x75   :  { %2179 = vmatpush3.bf16.msra.mxu1 %v2386_v56 }
  0x76   :  { %2180 = vmatprep.subr.bf16.mxu1 %v2455_v42 }
  0x77   :  { %2094 = vmatpush3.bf16.msra.mxu0 %v2388_v59 }
  0x78   :  { %2095 = vmatprep.subr.bf16.mxu0 %v2390_v61 }
  0x79   :  { %2181 = vmatpush3.bf16.msra.mxu1 %v2389_v62 }
  0x7a   :  { %2182 = vmatprep.subr.bf16.mxu1 %v2455_v42 }
  0x7b   :  { %2096 = vmatpush3.bf16.msra.mxu0 %v2391_v63 }
  0x7c   :  { %2097 = vmatprep.subr.bf16.mxu0 %v2393_v0 }
  0x7d   :  { %2183 = vmatpush3.bf16.msra.mxu1 %v2392_v1 }
  0x7e   :  { %2184 = vmatprep.subr.bf16.mxu1 %v2455_v42 }
  0x7f   :  { %2098 = vmatpush3.bf16.msra.mxu0 %v2394_v2 }
  0x80   :  { %2190 = vmatprep.subr.bf16.mxu0 %v2455_v42 }
  0x81   :  { %2185 = vmatpush3.bf16.msra.mxu1 %v2397_v3 }
  0x82   :  { %1292 = vmatmul.mubr.bf16.vlgmr.msra.gmra.mrb[12].mxu0 %v1869_v4  ;;  %2210 = vmatprep.subr.bf16.mxu1 %v2455_v42 }
  0x83   :  { %2206 = vmatprep.mubr.msk.bf16.mxu0 %vm2456_vm0, %v2455_v42 }
  0x84   :  { %2187 = vmatmul.mubr.bf16.vlgmr.msra.gmra.mrb[12].mxu1 %v2398_v5 }
  0x85   :  { %2226 = vmatprep.mubr.msk.bf16.mxu1 %vm2456_vm0, %v2455_v42 }
  0x86   :  { %15 = vsyncpa [#allocation3], 0  ;;  %v2399_v6 = vld [vmem:[%s3073_s5] sm:$0xff]   ;;  %v2401_v8 = vld [vmem:[%s3073_s5 + $0x8] sm:$0xff]   ;;  %s2457_s24 = smov [#allocation2]  }
  0x87   :  { %v2400_v7 = vld [vmem:[%s3074_s6] sm:$0xff]   ;;  %2191 = vmatpush3.bf16.msra.mxu0 %v2399_v6  ;;  %v2402_v9 = vld [vmem:[%s3074_s6 + $0x8] sm:$0xff]   ;;  %v2403_v10 = vld [vmem:[%s3073_s5 + $0x10] sm:$0xff]   ;;  %s1792_s25 = sshll.u32 %s2457_s24, 4  ;;  %s1793_s25 = int_to_ptr.vmem [resolvable:$true] %s1792_s25 }
  0x88   :  { %2211 = vmatpush3.bf16.msra.mxu1 %v2400_v7  ;;  %2192 = vmatprep.subr.bf16.mxu0 %v2455_v42  ;;  %v2404_v11 = vld [vmem:[%s3074_s6 + $0x10] sm:$0xff]   ;;  %v2405_v12 = vld [vmem:[%s3073_s5 + $0x18] sm:$0xff]   ;;  %v2407_v14 = vld [vmem:[%s3073_s5 + $0x20] sm:$0xff]   ;;  %p2436_p1 = scmp.lt.s32.totalorder %s1793_s25, %s1793_s25 }
  0x89   :  { %2212 = vmatprep.subr.bf16.mxu1 %v2455_v42  ;;  %v2406_v13 = vld [vmem:[%s3074_s6 + $0x18] sm:$0xff]   ;;  %v2408_v15 = vld [vmem:[%s3074_s6 + $0x20] sm:$0xff]   ;;  %v2409_v16 = vld [vmem:[%s3073_s5 + $0x28] sm:$0xff]  }
  0x8a   :  { %v2410_v17 = vld [vmem:[%s3074_s6 + $0x28] sm:$0xff]   ;;  %v2411_v18 = vld [vmem:[%s3073_s5 + $0x30] sm:$0xff]   ;;  %v2413_v20 = vld [vmem:[%s3073_s5 + $0x38] sm:$0xff]  }
  0x8b   :  { %2193 = vmatpush3.bf16.msra.mxu0 %v2401_v8  ;;  %v2412_v19 = vld [vmem:[%s3074_s6 + $0x30] sm:$0xff]   ;;  %v2414_v21 = vld [vmem:[%s3074_s6 + $0x38] sm:$0xff]   ;;  %v1800_v23 = vld [vmem:[%s3077_s9] ss:$0 sm:$0xff] }
  0x8c   :  { %2213 = vmatpush3.bf16.msra.mxu1 %v2402_v9  ;;  %2194 = vmatprep.subr.bf16.mxu0 %v2455_v42  ;;  %v1864_v48 = vld [vmem:[%s3077_s9 + $0x1] ss:$0 sm:$0xff] }
  0x8d   :  { %2214 = vmatprep.subr.bf16.mxu1 %v2455_v42  ;;  %v37_v62 = vld [vmem:[%s3070_s2] sm:$0xff] }
  0x8e   :  { %v40_v4 = vunpack.c.l.bf16 %v37_v62  ;;  %v42_v8 = vrot.slane %v37_v62, 4 }
  0x8f   :  { %2195 = vmatpush3.bf16.msra.mxu0 %v2403_v10 }
  0x90   :  { %2215 = vmatpush3.bf16.msra.mxu1 %v2404_v11  ;;  %2196 = vmatprep.subr.bf16.mxu0 %v2455_v42  ;;  %v44_v11 = vunpack.c.l.bf16 %v42_v8 }
  0x91   :  { %2216 = vmatprep.subr.bf16.mxu1 %v2455_v42 }
  0x93   :  { %2197 = vmatpush3.bf16.msra.mxu0 %v2405_v12 }
  0x94   :  { %2217 = vmatpush3.bf16.msra.mxu1 %v2406_v13  ;;  %2198 = vmatprep.subr.bf16.mxu0 %v2455_v42 }
  0x95   :  { %2218 = vmatprep.subr.bf16.mxu1 %v2455_v42 }
  0x97   :  { %2199 = vmatpush3.bf16.msra.mxu0 %v2407_v14  ;;  %v2415_v14 = vld [vmem:[%s3075_s7] sm:$0xff]  }
  0x98   :  { %2200 = vmatprep.subr.bf16.mxu0 %v2455_v42  ;;  %2219 = vmatpush3.bf16.msra.mxu1 %v2408_v15 }
  0x99   :  { %2220 = vmatprep.subr.bf16.mxu1 %v2455_v42 }
  0x9b   :  { %2201 = vmatpush3.bf16.msra.mxu0 %v2409_v16 }
  0x9c   :  { %2202 = vmatprep.subr.bf16.mxu0 %v2455_v42  ;;  %2221 = vmatpush3.bf16.msra.mxu1 %v2410_v17  ;;  %v2416_v17 = vld [vmem:[%s3076_s8] sm:$0xff]  }
  0x9d   :  { %2222 = vmatprep.subr.bf16.mxu1 %v2455_v42 }
  0x9f   :  { %2203 = vmatpush3.bf16.msra.mxu0 %v2411_v18 }
  0xa0   :  { %2204 = vmatprep.subr.bf16.mxu0 %v2455_v42  ;;  %2223 = vmatpush3.bf16.msra.mxu1 %v2412_v19  ;;  %v2417_v19 = vld [vmem:[%s3075_s7 + $0x8] sm:$0xff]  }
  0xa1   :  { %2224 = vmatprep.subr.bf16.mxu1 %v2455_v42 }
  0xa3   :  { %2205 = vmatpush3.bf16.msra.mxu0 %v2413_v20  ;;  %v2418_v20 = vld [vmem:[%s3076_s8 + $0x8] sm:$0xff]  }
  0xa4   :  { %2230 = vmatprep.subr.bf16.mxu0 %v2455_v42  ;;  %2225 = vmatpush3.bf16.msra.mxu1 %v2414_v21  ;;  %v2419_v21 = vld [vmem:[%s3075_s7 + $0x10] sm:$0xff]  }
  0xa5   :  { %2250 = vmatprep.subr.bf16.mxu1 %v2455_v42 }
  0xf5   :  { %v1980_v22 = vpop.f32.mrb[0].mxu0 }
  0xf6   :  { %v1981_v24 = vpop.f32.mrb[1].mxu0 }
  0xf7   :  { %v1982_v25 = vadd.f32 %v1981_v24, %v1980_v22  ;;  %v1983_v26 = vpop.f32.mrb[2].mxu0  ;;  %v2002_v27 = vpop.f32.mrb[0].mxu1  ;;  %v2420_v22 = vld [vmem:[%s3076_s8 + $0x10] sm:$0xff]   ;;  %v2422_v24 = vld [vmem:[%s3076_s8 + $0x18] sm:$0xff]  }
  0xf8   :  { %v1984_v28 = vpop.f32.mrb[3].mxu0  ;;  %v2003_v29 = vpop.f32.mrb[1].mxu1  ;;  %v2424_v26 = vld [vmem:[%s3076_s8 + $0x20] sm:$0xff]  }
  0xf9   :  { %v573_v30 = vadd.f32 %v1982_v25, %v1800_v23  ;;  %v2004_v31 = vadd.f32 %v2003_v29, %v2002_v27  ;;  %v2005_v32 = vpop.f32.mrb[2].mxu1  ;;  %v2421_v23 = vld [vmem:[%s3075_s7 + $0x18] sm:$0xff]   ;;  %v2423_v25 = vld [vmem:[%s3075_s7 + $0x20] sm:$0xff]   ;;  %v2425_v27 = vld [vmem:[%s3075_s7 + $0x28] sm:$0xff]  }
  0xfa   :  { %v2006_v33 = vpop.f32.mrb[3].mxu1  ;;  %v2426_v28 = vld [vmem:[%s3076_s8 + $0x28] sm:$0xff]   ;;  %v2427_v29 = vld [vmem:[%s3075_s7 + $0x30] sm:$0xff]   ;;  %v2430_v32 = vld [vmem:[%s3076_s8 + $0x38] sm:$0xff]  }
  0xfb   :  { %v613_v34 = vadd.f32 %v2004_v31, %v573_v30  ;;  %v2428_v30 = vld [vmem:[%s3076_s8 + $0x30] sm:$0xff]   ;;  %v2429_v31 = vld [vmem:[%s3075_s7 + $0x38] sm:$0xff]   ;;  %v38_v33 = vld [vmem:[%s3070_s2 + $0x8] sm:$0xff] }
 0x115   :  { %v2024_v35 = vpop.f32.mrb[4].mxu0 }
 0x116   :  { %v2025_v36 = vpop.f32.mrb[5].mxu0 }
 0x117   :  { %v2026_v37 = vadd.f32 %v2025_v36, %v2024_v35  ;;  %v2027_v38 = vpop.f32.mrb[6].mxu0  ;;  %v692_v39 = vpop.f32.mrb[4].mxu1  ;;  %v1937_v35 = vld [vmem:[%s3077_s9 + $0x3] ss:$0 sm:$0xff] }
 0x118   :  { %v2028_v40 = vpop.f32.mrb[7].mxu0  ;;  %v2168_v41 = vpop.f32.mrb[5].mxu1 }
 0x119   :  { %v653_v43 = vadd.f32 %v2026_v37, %v613_v34  ;;  %v695_v44 = vpop.f32.mrb[6].mxu1  ;;  %v45_v37 = vunpack.c.l.bf16 %v38_v33  ;;  %v47_v40 = vrot.slane %v38_v33, 4 }
 0x11a   :  { %v2169_v45 = vpop.f32.mrb[7].mxu1 }
 0x11b   :  { %v693_v46 = vadd.f32 %v692_v39, %v653_v43 }
 0x135   :  { %v2055_v47 = vpop.f32.mrb[8].mxu0 }
 0x136   :  { %v2056_v49 = vpop.f32.mrb[9].mxu0 }
 0x137   :  { %v2057_v50 = vadd.f32 %v2056_v49, %v2055_v47  ;;  %v2058_v51 = vpop.f32.mrb[10].mxu0  ;;  %v2077_v52 = vpop.f32.mrb[8].mxu1  ;;  %v49_v49 = vunpack.c.l.bf16 %v47_v40 }
 0x138   :  { %v2059_v53 = vpop.f32.mrb[11].mxu0  ;;  %v2078_v54 = vpop.f32.mrb[9].mxu1 }
 0x139   :  { %v1214_v55 = vadd.f32 %v2057_v50, %v1864_v48  ;;  %v2079_v56 = vadd.f32 %v2078_v54, %v2077_v52  ;;  %v2080_v57 = vpop.f32.mrb[10].mxu1 }
 0x13a   :  { %v2081_v58 = vpop.f32.mrb[11].mxu1  ;;  %v1955_v57 = vld [vmem:[%s3077_s9 + $0x5] ss:$0 sm:$0xff] }
 0x13b   :  { %v1254_v59 = vadd.f32 %v2079_v56, %v1214_v55  ;;  %v39_v55 = vld [vmem:[%s3070_s2 + $0x10] sm:$0xf]  ;;  %s2431_s2 = scalar_lea.vmem %s1793_s25, 128 }
 0x13c   :  { %p2432_p0 = scmp.ne.s32.totalorder %s1793_s25, %s2431_s2  ;;  %p2437_p2 = scmp.lt.s32.totalorder %s2431_s2, %s2431_s2 }
 0x13e   :  { %p2438_p3 = por %p2437_p2, %p2436_p1 }
 0x140   :  { %p2439_p4 = pnand %p2438_p3, %p2432_p0 }
 0x155   :  { %v2099_v60 = vpop.f32.mrb[12].mxu0 }
 0x156   :  { %v2100_v61 = vpop.f32.mrb[13].mxu0 }
 0x157   :  { %v2101_v63 = vadd.f32 %v2100_v61, %v2099_v60  ;;  %v2102_v0 = vpop.f32.mrb[14].mxu0  ;;  %v1333_v1 = vpop.f32.mrb[12].mxu1  ;;  %v1946_v60 = vld [vmem:[%s3077_s9 + $0x4] ss:$0 sm:$0xff] }
 0x158   :  { %v2103_v2 = vpop.f32.mrb[15].mxu0  ;;  %v2188_v3 = vpop.f32.mrb[13].mxu1 }
 0x159   :  { %v1294_v5 = vadd.f32 %v2101_v63, %v1254_v59  ;;  %v1336_v6 = vpop.f32.mrb[14].mxu1  ;;  %v50_v59 = vunpack.c.l.bf16 %v39_v55 }
 0x15a   :  { %v2189_v7 = vpop.f32.mrb[15].mxu1 }
 0x15b   :  { %v1334_v9 = vadd.f32 %v1333_v1, %v1294_v5 }
 0x15d   :  { %v1339_v10 = vmul.f32 %v1334_v9, %v40_v4 }
 0x15f   :  { %v1340_v12 = vadd.f32 %v1339_v10, %v693_v46 }
 0x161   :  { %v1341_v13 = vmax.f32 %v1340_v12, 0.0 }
 0x163   :  { %v1342_v15 = vmul.f32 %v1341_v13, %v44_v11  ;;  %v1344_v16 = vpack.c.bf16 %v1341_v13, %v1341_v13 }
 0x165   :  { %2207 = vmatmul.mubr.bf16.vlgmr.msra.gmra.mrb[16].mxu0 %v1344_v16  ;;  %v1343_v18 = vpack.c.bf16 %v1342_v15, %v1342_v15 }
 0x166   :  { %2231 = vmatpush3.bf16.msra.mxu0 %v2415_v14  ;;  %2246 = vmatprep.mubr.msk.bf16.mxu0 %vm2456_vm0, %v2455_v42 }
 0x167   :  { %2227 = vmatmul.mubr.bf16.vlgmr.msra.gmra.mrb[16].mxu1 %v1343_v18  ;;  %2232 = vmatprep.subr.bf16.mxu0 %v2455_v42 }
 0x168   :  { %2251 = vmatpush3.bf16.msra.mxu1 %v2416_v17  ;;  %2266 = vmatprep.mubr.msk.bf16.mxu1 %vm2456_vm0, %v2455_v42 }
 0x169   :  { %2252 = vmatprep.subr.bf16.mxu1 %v2455_v42 }
 0x16a   :  { %2233 = vmatpush3.bf16.msra.mxu0 %v2417_v19 }
 0x16b   :  { %2234 = vmatprep.subr.bf16.mxu0 %v2455_v42 }
 0x16c   :  { %2253 = vmatpush3.bf16.msra.mxu1 %v2418_v20 }
 0x16d   :  { %2254 = vmatprep.subr.bf16.mxu1 %v2455_v42 }
 0x16e   :  { %2235 = vmatpush3.bf16.msra.mxu0 %v2419_v21 }
 0x16f   :  { %2236 = vmatprep.subr.bf16.mxu0 %v2455_v42 }
 0x170   :  { %2255 = vmatpush3.bf16.msra.mxu1 %v2420_v22 }
 0x171   :  { %2256 = vmatprep.subr.bf16.mxu1 %v2455_v42 }
 0x172   :  { %2237 = vmatpush3.bf16.msra.mxu0 %v2421_v23 }
 0x173   :  { %2238 = vmatprep.subr.bf16.mxu0 %v2455_v42 }
 0x174   :  { %2257 = vmatpush3.bf16.msra.mxu1 %v2422_v24 }
 0x175   :  { %2258 = vmatprep.subr.bf16.mxu1 %v2455_v42 }
 0x176   :  { %2239 = vmatpush3.bf16.msra.mxu0 %v2423_v25 }
 0x177   :  { %2240 = vmatprep.subr.bf16.mxu0 %v2455_v42 }
 0x178   :  { %2259 = vmatpush3.bf16.msra.mxu1 %v2424_v26 }
 0x179   :  { %2260 = vmatprep.subr.bf16.mxu1 %v2455_v42 }
 0x17a   :  { %2241 = vmatpush3.bf16.msra.mxu0 %v2425_v27 }
 0x17b   :  { %2242 = vmatprep.subr.bf16.mxu0 %v2455_v42 }
 0x17c   :  { %2261 = vmatpush3.bf16.msra.mxu1 %v2426_v28 }
 0x17d   :  { %2262 = vmatprep.subr.bf16.mxu1 %v2455_v42 }
 0x17e   :  { %2243 = vmatpush3.bf16.msra.mxu0 %v2427_v29 }
 0x17f   :  { %2244 = vmatprep.subr.bf16.mxu0 %v2455_v42 }
 0x180   :  { %2263 = vmatpush3.bf16.msra.mxu1 %v2428_v30 }
 0x181   :  { %2264 = vmatprep.subr.bf16.mxu1 %v2455_v42  ;;  %v1928_v42 = vld [vmem:[%s3077_s9 + $0x2] ss:$0 sm:$0xff] }
 0x182   :  { %2245 = vmatpush3.bf16.msra.mxu0 %v2429_v31 }
 0x184   :  { %2265 = vmatpush3.bf16.msra.mxu1 %v2430_v32 }
 0x238   :  { %v1447_v34 = vpop.f32.mrb[16].mxu0 }
 0x239   :  { %v2208_v36 = vpop.f32.mrb[17].mxu0  ;;  %v1448_v46 = vadd.f32 %v1928_v42, %v1447_v34 }
 0x23a   :  { %v1450_v38 = vpop.f32.mrb[18].mxu0  ;;  %v1555_v39 = vpop.f32.mrb[16].mxu1 }
 0x23b   :  { %v1556_v41 = vadd.f32 %v1937_v35, %v1555_v39  ;;  %v2209_v43 = vpop.f32.mrb[19].mxu0  ;;  %v2228_v44 = vpop.f32.mrb[17].mxu1 }
 0x23c   :  { %v1558_v45 = vpop.f32.mrb[18].mxu1 }
 0x23d   :  { %v1561_v47 = vmul.f32 %v1556_v41, %v45_v37  ;;  %v2229_v48 = vpop.f32.mrb[19].mxu1 }
 0x23f   :  { %v1562_v50 = vadd.f32 %v1561_v47, %v1448_v46 }
 0x241   :  { %v1563_v51 = vmax.f32 %v1562_v50, 0.0 }
 0x243   :  { %v1564_v52 = vmul.f32 %v1563_v51, %v49_v49  ;;  %v1566_v53 = vpack.c.bf16 %v1563_v51, %v1563_v51 }
 0x245   :  { %2247 = vmatmul.mubr.bf16.vlgmr.msra.gmra.mrb[20].mxu0 %v1566_v53  ;;  %v1565_v54 = vpack.c.bf16 %v1564_v52, %v1564_v52 }
 0x247   :  { %2267 = vmatmul.mubr.bf16.vlgmr.msra.gmra.mrb[20].mxu1 %v1565_v54 }
 0x318   :  { %v1669_v56 = vpop.f32.mrb[20].mxu0 }
 0x319   :  { %v2248_v58 = vpop.f32.mrb[21].mxu0  ;;  %v1670_v3 = vadd.f32 %v1946_v60, %v1669_v56 }
 0x31a   :  { %v1672_v61 = vpop.f32.mrb[22].mxu0  ;;  %v1777_v62 = vpop.f32.mrb[20].mxu1 }
 0x31b   :  { %v1778_v63 = vadd.f32 %v1955_v57, %v1777_v62  ;;  %v2249_v0 = vpop.f32.mrb[23].mxu0  ;;  %v2268_v1 = vpop.f32.mrb[21].mxu1 }
 0x31c   :  { %v1780_v2 = vpop.f32.mrb[22].mxu1 }
 0x31d   :  { %v1783_v4 = vmul.f32 %v1778_v63, %v50_v59  ;;  %v2269_v5 = vpop.f32.mrb[23].mxu1 }
 0x31f   :  { %v1784_v6 = vadd.f32 %v1783_v4, %v1670_v3 }
 0x321   :  { %1785 = vst [vmem:[#allocation2] sm:$0xff] %v1784_v6 }
 0x322   :  { %2442 = shalt.err (!%p2439_p4)
}
 0x323   :  { %s2443_s26 = scalar_lea.hbm %s3078_s10, 128 }
 0x324   :  { %p2444_p5 = scmp.ne.s32.totalorder %s3078_s10, %s2443_s26  ;;  %p2447_p6 = scmp.lt.u32.totalorder %s2443_s26, %s3078_s10 }
 0x326   :  { %p2449_p7 = pnand %p2447_p6, %p2444_p5 }
 0x328   :  { %2452 = shalt.err (!%p2449_p7)
}
 0x329   :  { %1795 = dma.vmem_to_hbm [thread:$0]  %s1793_s25, 128, %s3078_s10, [#allocation3]  }
 0x32a   :  { %2453 = dma.done.wait [#allocation3], 128  }
 0x32b   :  { %2454 = vsyncadd [#allocation3], 4294967168 }
 0x32c   :  { %1799 = vsyncpa [#allocation3], 1 }

</bundles_post_ra>
